<compile_context>
chip_gen: v5e
topology: v5e:2x2
jax: 0.10.0
libtpu: 0.0.40
codegen_flags: <defaults>
</compile_context>

<pallas_src>
import jax
import jax.numpy as jnp
from jax.experimental import pallas as pl
from jax.experimental.pallas import tpu as pltpu


def _pick_bt(B):
    """Images folded per grid step: as many as possible (<=8) while keeping
    >=2 grid steps when the batch allows (v7x megacore wants >=2 parallel steps)."""
    divisors = [bt for bt in (8, 4, 2, 1) if B % bt == 0]
    multi = [bt for bt in divisors if B // bt >= 2]
    return max(multi) if multi else max(divisors)


def fastreid_forward(x_nchw, params):
    """Synthetic FastReID.forward: NCHW images -> (B, Cmid) embeddings."""
    B, Cin, H, W = x_nchw.shape
    Cmid = params["conv_w"].shape[0]

    K = 9 * Cin                               # tap-stacked contraction dim
    Co = ((Cmid + 127) // 128) * 128          # lane-dense output channels
    N = H * W                                 # valid output pixels per image
    Npad = ((N + 7) // 8) * 8                 # sublane-aligned rows per image
    Bt = _pick_bt(B)                          # images folded per grid step
    G = B // Bt                               # grid length
    M = Bt * Npad                             # matmul M per grid step

    eps = 1e-5
    inv_n = 1.0 / float(N)

    # ---- wrapper-side layout prep (cheap XLA ops, done once) ----------------
    x_nhwc = jnp.transpose(x_nchw, (0, 2, 3, 1)).astype(jnp.float32)
    xp = jnp.pad(x_nhwc, ((0, 0), (1, 1), (1, 1), (0, 0)))       # (B, H+2, W+2, Cin)
    # tap-stack: row per output pixel, 9 shifted taps concatenated on channels
    taps = [xp[:, dy:dy + H, dx:dx + W, :] for dy in range(3) for dx in range(3)]
    xs = jnp.concatenate(taps, axis=-1).reshape(B, N, K)         # (B, HW, 9*Cin)
    xs = jnp.pad(xs, ((0, 0), (0, Npad - N), (0, 0)))            # sublane-align rows
    xs = xs.reshape(B * Npad, K).astype(jnp.bfloat16)

    # conv weights: torch (Cout, Cin, 3, 3) -> single 2-D (9*Cin, Co), bf16,
    # row order (dy, dx, ci) matching the tap-stack above.
    w = jnp.transpose(params["conv_w"], (2, 3, 1, 0)).reshape(K, Cmid)
    w2 = jnp.pad(w, ((0, 0), (0, Co - Cmid))).astype(jnp.bfloat16)

    def _affine(gamma, beta, mean, var):
        s = gamma / jnp.sqrt(var + eps)
        b = beta - mean * s
        return jnp.pad(s, (0, Co - Cmid)), jnp.pad(b, (0, Co - Cmid))

    s1, b1 = _affine(params["bn1_gamma"], params["bn1_beta"],
                     params["bn1_mean"], params["bn1_var"])
    s2, b2 = _affine(params["bnn_gamma"], params["bnn_beta"],
                     params["bnn_mean"], params["bnn_var"])
    bn = jnp.stack([s1, b1, s2, b2], axis=0).astype(jnp.float32)  # (4, Co)

    # ---- fused kernel: 1 conv matmul + BN + ReLU + MXU-GAP + BN-neck ---------
    def kernel(x_ref, w_ref, bn_ref, out_ref):
        # x_ref: (M, K) bf16   w_ref: (K, Co) bf16   bn_ref: (4, Co) f32
        # out_ref: (1, Bt, Co) f32
        acc = jnp.dot(x_ref[...], w_ref[...],
                      preferred_element_type=jnp.float32)         # (M, Co) f32
        feat = jnp.maximum(acc * bn_ref[0:1, :] + bn_ref[1:2, :], 0.0)
        # block-diagonal mean pooling on the MXU; mask built in-register
        # (padded rows beyond N per image are excluded, so no garbage is summed).
        row = jax.lax.broadcasted_iota(jnp.int32, (Bt, M), 0)
        col = jax.lax.broadcasted_iota(jnp.int32, (Bt, M), 1)
        lo = row * Npad
        sel = (col >= lo) & (col < lo + N)
        poolw = jnp.where(sel, jnp.float32(inv_n), jnp.float32(0.0))
        pooled = jnp.dot(poolw, feat,
                         preferred_element_type=jnp.float32)      # (Bt, Co)
        out_ref[0, :, :] = pooled * bn_ref[2:3, :] + bn_ref[3:4, :]

    out3 = pl.pallas_call(
        kernel,
        out_shape=jax.ShapeDtypeStruct((G, Bt, Co), jnp.float32),
        grid_spec=pltpu.PrefetchScalarGridSpec(
            num_scalar_prefetch=0,
            grid=(G,),
            in_specs=[
                pl.BlockSpec((M, K), lambda g: (g, 0)),      # tap-stacked image rows
                pl.BlockSpec((K, Co), lambda g: (0, 0)),     # 2-D conv weight (resident)
                pl.BlockSpec((4, Co), lambda g: (0, 0)),     # [s1; b1; s2; b2]
            ],
            out_specs=pl.BlockSpec((1, Bt, Co), lambda g: (g, 0, 0)),
        ),
        compiler_params=pltpu.CompilerParams(
            dimension_semantics=("parallel",),               # shard batch across TCs
            vmem_limit_bytes=8 * 1024 * 1024,                # actual need is a few MB
        ),
    )(xs, w2, bn)

    return out3.reshape(B, Co)[:, :Cmid]                     # drop lane padding


def reference_forward(x_nchw, params):
    """Pure-JAX reference (same bf16 input rounding as the kernel)."""
    eps = 1e-5
    x = jnp.transpose(x_nchw, (0, 2, 3, 1)).astype(jnp.float32)
    x = x.astype(jnp.bfloat16).astype(jnp.float32)
    w = jnp.transpose(params["conv_w"], (2, 3, 1, 0))
    w = w.astype(jnp.bfloat16).astype(jnp.float32)
    y = jax.lax.conv_general_dilated(
        x, w, window_strides=(1, 1), padding="SAME",
        dimension_numbers=("NHWC", "HWIO", "NHWC"))
    s1 = params["bn1_gamma"] / jnp.sqrt(params["bn1_var"] + eps)
    b1 = params["bn1_beta"] - params["bn1_mean"] * s1
    y = jnp.maximum(y * s1 + b1, 0.0)
    p = jnp.mean(y, axis=(1, 2))
    s2 = params["bnn_gamma"] / jnp.sqrt(params["bnn_var"] + eps)
    b2 = params["bnn_beta"] - params["bnn_mean"] * s2
    return p * s2 + b2


def init_params(key, cin=4, cmid=32):
    """Deterministic synthetic parameters (no checkpoint load)."""
    k1, k2, k3, k4, k5 = jax.random.split(key, 5)
    return {
        "conv_w": 0.1 * jax.random.normal(k1, (cmid, cin, 3, 3), jnp.float32),
        "bn1_gamma": 1.0 + 0.05 * jax.random.normal(k2, (cmid,), jnp.float32),
        "bn1_beta": 0.05 * jax.random.normal(k3, (cmid,), jnp.float32),
        "bn1_mean": jnp.zeros((cmid,), jnp.float32),
        "bn1_var": jnp.ones((cmid,), jnp.float32),
        "bnn_gamma": 1.0 + 0.05 * jax.random.normal(k4, (cmid,), jnp.float32),
        "bnn_beta": 0.05 * jax.random.normal(k5, (cmid,), jnp.float32),
        "bnn_mean": jnp.zeros((cmid,), jnp.float32),
        "bnn_var": jnp.ones((cmid,), jnp.float32),
    }


if __name__ == "__main__":
    key = jax.random.PRNGKey(0)
    kx, kp = jax.random.split(key)
    B, Cin, H, W = 2, 4, 16, 16
    x = jax.random.normal(kx, (B, Cin, H, W), jnp.float32)   # NCHW like PyTorch
    params = init_params(kp, cin=Cin, cmid=32)

    emb = jax.jit(fastreid_forward)(x, params)
    emb = jax.block_until_ready(emb)
    assert emb.shape == (B, 32) and emb.dtype == jnp.float32

    ref = reference_forward(x, params)
    assert jnp.allclose(emb, ref, atol=1e-2, rtol=1e-2), (
        "max abs err = %f" % float(jnp.max(jnp.abs(emb - ref))))
    print("KERNEL_OK")
</pallas_src>

<mosaic_0001>
module attributes {stable_mosaic.version = 11 : i64} {
  func.func @kernel(%arg0: i32, %arg1: memref<256x36xbf16, #tpu.memory_space<vmem>>, %arg2: memref<36x128xbf16, #tpu.memory_space<vmem>>, %arg3: memref<4x128xf32, #tpu.memory_space<vmem>>, %arg4: memref<1x1x128xf32, #tpu.memory_space<vmem>>) attributes {dimension_semantics = [#tpu.dimension_semantics<parallel>], iteration_bounds = array<i64: 2>, scalar_prefetch = 0 : i64, scratch_operands = 0 : i64, tpu.core_type = #tpu.core_type<tc>, window_params = [{transform_indices = @transform_0, window_bounds = array<i64: 256, 36>}, {pipeline_mode = #tpu.pipeline_mode<synchronous>, transform_indices = @transform_1, window_bounds = array<i64: 36, 128>}, {pipeline_mode = #tpu.pipeline_mode<synchronous>, transform_indices = @transform_2, window_bounds = array<i64: 4, 128>}, {transform_indices = @transform_3, window_bounds = array<i64: 1, 1, 128>}]} {
    %c0 = arith.constant 0 : index
    %c0_0 = arith.constant 0 : index
    %0 = vector.load %arg1[%c0, %c0_0] : memref<256x36xbf16, #tpu.memory_space<vmem>>, vector<256x36xbf16>
    %c0_1 = arith.constant 0 : index
    %c0_2 = arith.constant 0 : index
    %1 = vector.load %arg2[%c0_1, %c0_2] : memref<36x128xbf16, #tpu.memory_space<vmem>>, vector<36x128xbf16>
    %cst = arith.constant dense<0.000000e+00> : vector<256x128xf32>
    %2 = tpu.matmul %0, %1, %cst {dimension_numbers = #tpu.dot_dimension_numbers<[1], [0], [0], [1], [0, 0, 1, 1], [], []>} : vector<256x36xbf16>, vector<36x128xbf16>, vector<256x128xf32> -> vector<256x128xf32>
    %c0_3 = arith.constant 0 : index
    %c0_4 = arith.constant 0 : index
    %3 = vector.load %arg3[%c0_3, %c0_4] : memref<4x128xf32, #tpu.memory_space<vmem>>, vector<1x128xf32>
    %4 = vector.broadcast %3 : vector<1x128xf32> to vector<256x128xf32>
    %5 = arith.mulf %2, %4 : vector<256x128xf32>
    %c1 = arith.constant 1 : index
    %c0_5 = arith.constant 0 : index
    %6 = vector.load %arg3[%c1, %c0_5] : memref<4x128xf32, #tpu.memory_space<vmem>>, vector<1x128xf32>
    %7 = vector.broadcast %6 : vector<1x128xf32> to vector<256x128xf32>
    %8 = arith.addf %5, %7 : vector<256x128xf32>
    %cst_6 = arith.constant 0.000000e+00 : f32
    %9 = vector.broadcast %cst_6 : f32 to vector<256x128xf32>
    %10 = arith.maximumf %8, %9 : vector<256x128xf32>
    %11 = tpu.iota {dimensions = array<i32: 0>} : vector<1x256xi32>
    %12 = tpu.iota {dimensions = array<i32: 1>} : vector<1x256xi32>
    %c256_i32 = arith.constant 256 : i32
    %13 = vector.broadcast %c256_i32 : i32 to vector<1x256xi32>
    %14 = arith.muli %11, %13 : vector<1x256xi32>
    %15 = arith.cmpi sge, %12, %14 : vector<1x256xi32>
    %c256_i32_7 = arith.constant 256 : i32
    %16 = vector.broadcast %c256_i32_7 : i32 to vector<1x256xi32>
    %17 = arith.addi %14, %16 : vector<1x256xi32>
    %18 = arith.cmpi slt, %12, %17 : vector<1x256xi32>
    %19 = arith.andi %15, %18 : vector<1x256xi1>
    %cst_8 = arith.constant 3.906250e-03 : f32
    %cst_9 = arith.constant 0.000000e+00 : f32
    %20 = vector.broadcast %cst_8 : f32 to vector<1x256xf32>
    %21 = vector.broadcast %cst_9 : f32 to vector<1x256xf32>
    %22 = arith.select %19, %20, %21 : vector<1x256xi1>, vector<1x256xf32>
    %cst_10 = arith.constant dense<0.000000e+00> : vector<1x128xf32>
    %23 = tpu.matmul %22, %10, %cst_10 {dimension_numbers = #tpu.dot_dimension_numbers<[1], [0], [0], [1], [0, 0, 1, 1], [], []>} : vector<1x256xf32>, vector<256x128xf32>, vector<1x128xf32> -> vector<1x128xf32>
    %c2 = arith.constant 2 : index
    %c0_11 = arith.constant 0 : index
    %24 = vector.load %arg3[%c2, %c0_11] : memref<4x128xf32, #tpu.memory_space<vmem>>, vector<1x128xf32>
    %25 = arith.mulf %23, %24 : vector<1x128xf32>
    %c3 = arith.constant 3 : index
    %c0_12 = arith.constant 0 : index
    %26 = vector.load %arg3[%c3, %c0_12] : memref<4x128xf32, #tpu.memory_space<vmem>>, vector<1x128xf32>
    %27 = arith.addf %25, %26 : vector<1x128xf32>
    %c0_13 = arith.constant 0 : index
    %c0_14 = arith.constant 0 : index
    %c0_15 = arith.constant 0 : index
    %28 = vector.load %arg4[%c0_13, %c0_14, %c0_15] : memref<1x1x128xf32, #tpu.memory_space<vmem>>, vector<1x1x128xf32>
    %29 = vector.shape_cast %28 : vector<1x1x128xf32> to vector<1x128xf32>
    %30 = vector.shape_cast %27 : vector<1x128xf32> to vector<1x1x128xf32>
    tpu.vector_store %arg4[%c0_13, %c0_14, %c0_15], %30 {strides = array<i32>} : memref<1x1x128xf32, #tpu.memory_space<vmem>>, vector<1x1x128xf32>,
    return
  }
  func.func @transform_0(%arg0: i32) -> (i32, i32) {
    %c0_i32 = arith.constant 0 : i32
    %c0_i32_0 = arith.constant 0 : i32
    return %arg0, %c0_i32 : i32, i32
  }
  func.func @transform_1(%arg0: i32) -> (i32, i32) {
    %c0_i32 = arith.constant 0 : i32
    %c0_i32_0 = arith.constant 0 : i32
    %c0_i32_1 = arith.constant 0 : i32
    return %c0_i32, %c0_i32_0 : i32, i32
  }
  func.func @transform_2(%arg0: i32) -> (i32, i32) {
    %c0_i32 = arith.constant 0 : i32
    %c0_i32_0 = arith.constant 0 : i32
    %c0_i32_1 = arith.constant 0 : i32
    return %c0_i32, %c0_i32_0 : i32, i32
  }
  func.func @transform_3(%arg0: i32) -> (i32, i32, i32) {
    %c0_i32 = arith.constant 0 : i32
    %c0_i32_0 = arith.constant 0 : i32
    %c0_i32_1 = arith.constant 0 : i32
    return %arg0, %c0_i32, %c0_i32_0 : i32, i32, i32
  }
}

</mosaic_0001>

<bundles_post_ra>
// kernel: fastreid_forward.1
= control target key start
LH: loop header
LB: loop body
LE: loop exit
PB: predicated region body
PF: predicated region fallthrough
CT: control target
= control target key end

     0   :  { %8 = vsyncpa [#allocation3], 0  ;;  %s1170_s0 = inlined_call_operand.vmem [shape: bf16[512,36], index: 0, kind: input, shape index: {}]   ;;  %s1171_s1 = inlined_call_operand.vmem [shape: bf16[36,128], index: 1, kind: input, shape index: {}]   ;;  %s1172_s2 = inlined_call_operand.vmem [shape: f32[4,128], index: 2, kind: input, shape index: {}]   ;;  %s1173_s3 = inlined_call_operand.hbm [shape: f32[2,1,128], index: 3, kind: output, shape index: {}]  }
   0x1   :  { %10 = vsyncpa [#allocation3 + $0x1], 0  ;;  %s925_s12 = smov 0   ;;  %s927_s13 = smov 0  }
   0x2   :  { %s929_s14 = smov 0   ;;  %s931_s15 = smov 0  }
   0x3 LB: > { %s946_s16 = sadd.s32 4294967295, %s902_s15   ;;  %s673_s17 = sadd.s32 4294967294, %s902_s15   ;;  %s902_s15 = sphi %s931_s15, %s1179_s15   ;;  %s898_s14 = sphi %s929_s14, %s1178_s14   ;;  %s894_s13 = sphi %s927_s13, %s1177_s13   ;;  %s890_s12 = sphi %s925_s12, %s1176_s12  }
   0x4   : > { %s950_s18 = sadd.s32 1, %s902_s15   ;;  %s91_s19 = sadd.s32 1, %s898_s14 }
   0x5   : > { %s88_s20 = ssub.s32 %s902_s15, %s950_s18  ;;  %p101_p0 = scmp.ne.s32.totalorder %s898_s14, %s894_s13 }
   0x6   : > { %p89_p1 = scmp.eq.s32.totalorder %s88_s20, 0  ;;  %p102_p2 = scmp.eq.s32.totalorder %s946_s16, 1 }
   0x7   : > { %p107_p3 = scmp.ne.s32.totalorder %s894_s13, %s890_s12  ;;  %p108_p4 = scmp.eq.s32.totalorder %s673_s17, 1 }
   0x8   : > { %s961_s21 = scalar_select %p89_p1, %s898_s14, %s91_s19  }
   0x9   : > { %p963_p5 = por %p102_p2, %p101_p0  ;;  %p967_p6 = por %p108_p4, %p107_p3 }
   0xa   : > { %p676_p7 = scmp.ge.s32.totalorder %s902_s15, 1  ;;  %p141_p8 = scmp.lt.s32.totalorder %s902_s15, 3 }
   0xc   : > { %p142_p9 = pnand %p676_p7, %p141_p8 }
   0xd   : > { %s677_s26 = sshll.u32 (!%p142_p9), %s946_s16, 5  ;;  %s162_s17 = sand.u32 (!%p142_p9), 1, %s894_s13  }
   0xe   : > { %145 = sbr.rel (%p142_p9) target bundleno = 418 (0x1a2), region = 32  ;;  %p165_p10 = scmp.lt.s32.totalorder (!%p142_p9), %s677_s26, 63 }
   0xf   : > { %s614_s24 = scalar_lea.hbm (!%p142_p9), %s1173_s3, %s946_s16  ;;  %s606_s16 = scalar_lea.sflag (!%p142_p9), [#allocation3], %s162_s17 }
  0x10   : > { %s618_s4 = sshll.u32 (!%p142_p9), %s614_s24, 4  ;;  %s860_s9 = scalar_lea.hbm (!%p142_p9), %s1173_s3, 2  ;;  %s619_s4 = int_to_ptr.hbm [resolvable:$true] %s618_s4 }
  0x11   : > { %s854_s5 = sshra.s32 (!%p142_p9), %s619_s4, 4  ;;  %s855_s5 = int_to_ptr.hbm [resolvable:$true] %s854_s5 }
  0x12   : > { %s856_s6 = scalar_lea.hbm (!%p142_p9), %s855_s5, 1  ;;  %p861_p0 = scmp.lt.s32.totalorder (!%p142_p9), %s855_s5, %s1173_s3 }
  0x13   : > { %v207_v0 = vld [vmem:[%s1171_s1 + $0x10] sm:$0x3]  ;;  %vm352_vm0 = vcmask 1041408   ;;  %s1181_s26 = smov (!%p165_p10, %s677_s26), 63  ;;  %v788_v4 = vld [vmem:[%s1171_s1 + $0x8] sm:$0xff]  ;;  %v787_v5 = vld [vmem:[%s1171_s1] sm:$0xff]  ;;  %p857_p11 = scmp.ne.s32.totalorder %s855_s5, %s856_s6 }
  0x14   : > { %v297_v1 = vunpack.c.l.b16 %v207_v0  ;;  %s678_s29 = sshll.u32 %s1181_s26, 2  ;;  %vm303_vm1 = vcmask 293888   ;;  %v1029_v27 = vld [vmem:[%s1172_s2] ss:$0 sm:$0xff]  ;;  %v1037_v31 = vld [vmem:[%s1172_s2 + $0x1] ss:$0 sm:$0xff]  ;;  %p862_p1 = scmp.lt.s32.totalorder %s860_s9, %s856_s6 }
  0x15   : > { %s986_s7 = scalar_lea.vmem %s1170_s0, %s678_s29  ;;  %s163_s29 = scalar_lea.vmem [#allocation2], %s162_s17 }
  0x16   : > { %v300_v2 = vpack.c.b16 %v297_v1, %v297_v1  ;;  %v771_v6 = vld [vmem:[%s986_s7] sm:$0xff]  ;;  %v782_v7 = vld [vmem:[%s986_s7 + $0x58] sm:$0xff]  ;;  %v776_v9 = vld [vmem:[%s986_s7 + $0x28] sm:$0xff]  ;;  %s616_s30 = sshll.u32 %s163_s29, 4  ;;  %p858_p12 = pnand %p857_p11, %p963_p5  ;;  %s617_s30 = int_to_ptr.vmem [resolvable:$true] %s616_s30 }
  0x17   : > { %v778_v8 = vld [vmem:[%s986_s7 + $0x38] sm:$0xff]  ;;  %v772_v10 = vld [vmem:[%s986_s7 + $0x8] sm:$0xff]  ;;  %v783_v11 = vld [vmem:[%s986_s7 + $0x60] sm:$0xff]  ;;  %p863_p2 = por %p862_p1, %p861_p0 }
  0x18   : > { %v354_v3 = vsel %vm352_vm0, %v300_v2, 0  ;;  %v779_v12 = vld [vmem:[%s986_s7 + $0x40] sm:$0xff]  ;;  %v777_v13 = vld [vmem:[%s986_s7 + $0x30] sm:$0xff]  ;;  %v784_v15 = vld [vmem:[%s986_s7 + $0x68] sm:$0xff]  ;;  %p859_p13 = pneg %p858_p12 }
  0x19   : > { %361 = vmatpush.bf16.msra.mxu0 %v354_v3  ;;  %791 = vmatpush.bf16.msra.mxu3 %v354_v3  ;;  %v773_v14 = vld [vmem:[%s986_s7 + $0x10] sm:$0xff]  ;;  %v780_v16 = vld [vmem:[%s986_s7 + $0x48] sm:$0xff]  ;;  %v774_v17 = vld [vmem:[%s986_s7 + $0x18] sm:$0xff] }
  0x1a   : > { %790 = vmatpush.bf16.msra.mxu2 %v354_v3  ;;  %789 = vmatpush.bf16.msra.mxu1 %v354_v3  ;;  %v785_v18 = vld [vmem:[%s986_s7 + $0x70] sm:$0xff]  ;;  %v775_v20 = vld [vmem:[%s986_s7 + $0x20] sm:$0xff]  ;;  %v786_v21 = vld [vmem:[%s986_s7 + $0x78] sm:$0xff]  ;;  %p864_p3 = pnand %p863_p2, %p859_p13 }
  0x1b   : > { %v781_v19 = vld [vmem:[%s986_s7 + $0x50] sm:$0xff] }
  0x1d   : > { %362 = vmatpush.bf16.msra.mxu0 %v788_v4  ;;  %794 = vmatpush.bf16.msra.mxu3 %v788_v4 }
  0x1e   : > { %793 = vmatpush.bf16.msra.mxu2 %v788_v4  ;;  %792 = vmatpush.bf16.msra.mxu1 %v788_v4 }
  0x21   : > { %363 = vmatpush.bf16.msra.mxu0 %v787_v5  ;;  %797 = vmatpush.bf16.msra.mxu3 %v787_v5 }
  0x22   : > { %796 = vmatpush.bf16.msra.mxu2 %v787_v5  ;;  %795 = vmatpush.bf16.msra.mxu1 %v787_v5 }
  0x24   : > { %751 = vmatmul.msk.bf16.vlgmr.msra.gmra.mxu0 %vm303_vm1, %v771_v6  ;;  %762 = vmatmul.msk.bf16.vlgmr.msra.gmra.mxu3 %vm303_vm1, %v782_v7 }
  0x25   : > { %758 = vmatmul.msk.bf16.vlgmr.msra.gmra.mxu2 %vm303_vm1, %v778_v8  ;;  %756 = vmatmul.msk.bf16.vlgmr.msra.gmra.mxu1 %vm303_vm1, %v776_v9 }
  0x34   : > { %752 = vmatmul.msk.bf16.gmra.mxu0 %vm303_vm1, %v772_v10  ;;  %763 = vmatmul.msk.bf16.gmra.mxu3 %vm303_vm1, %v783_v11 }
  0x35   : > { %759 = vmatmul.msk.bf16.gmra.mxu2 %vm303_vm1, %v779_v12  ;;  %757 = vmatmul.msk.bf16.gmra.mxu1 %vm303_vm1, %v777_v13 }
  0x44   : > { %753 = vmatmul.msk.bf16.gmra.mxu0 %vm303_vm1, %v773_v14  ;;  %764 = vmatmul.msk.bf16.gmra.mxu3 %vm303_vm1, %v784_v15 }
  0x45   : > { %760 = vmatmul.msk.bf16.gmra.mxu2 %vm303_vm1, %v780_v16 }
  0x54   : > { %754 = vmatmul.msk.bf16.gmra.mxu0 %vm303_vm1, %v774_v17  ;;  %765 = vmatmul.msk.bf16.gmra.mxu3 %vm303_vm1, %v785_v18 }
  0x55   : > { %761 = vmatmul.msk.bf16.gmra.mxu2 %vm303_vm1, %v781_v19 }
  0x64   : > { %755 = vmatmul.msk.bf16.gmra.mxu0 %vm303_vm1, %v775_v20  ;;  %766 = vmatmul.msk.bf16.gmra.mxu3 %vm303_vm1, %v786_v21  ;;  %v545_v20 = vlaneseq }
  0xa1   : > { %v1020_v22 = vpop.f32.mrf.mxu0 }
  0xa2   : > { %v390_v23 = vpop.f32.mrf.mxu1 }
  0xa3   : > { %v457_v48 = vmul.f32 %v1029_v27, %v390_v23 }
  0xa5   : > { %v491_v55 = vadd.f32 %v1037_v31, %v457_v48 }
  0xa7   : > { %v1022_v24 = vpop.f32.mrf.mxu3  ;;  %v523_v56 = vmax.f32 %v491_v55, 0.0 }
  0xa8   : > { %v400_v25 = vpop.f32.mrf.mxu2 }
  0xa9   : > { %v1024_v26 = vpop.f32.mrf.mxu0  ;;  %v461_v29 = vmul.f32 %v1029_v27, %v400_v25 }
  0xaa   : > { %v392_v28 = vpop.f32.mrf.mxu1 }
  0xab   : > { %v495_v35 = vadd.f32 %v1037_v31, %v461_v29  ;;  %v458_v45 = vmul.f32 %v1029_v27, %v392_v28 }
  0xad   : > { %v527_v39 = vmax.f32 %v495_v35, 0.0  ;;  %v492_v53 = vadd.f32 %v1037_v31, %v458_v45 }
  0xaf   : > { %v1032_v30 = vpop.f32.mrf.mxu3  ;;  %v524_v54 = vmax.f32 %v492_v53, 0.0 }
  0xb0   : > { %v402_v32 = vpop.f32.mrf.mxu2 }
  0xb1   : > { %v1039_v33 = vpop.f32.mrf.mxu0  ;;  %v462_v34 = vmul.f32 %v1029_v27, %v402_v32 }
  0xb2   : > { %v395_v36 = vpop.f32.mrf.mxu1 }
  0xb3   : > { %v496_v37 = vadd.f32 %v1037_v31, %v462_v34  ;;  %v459_v43 = vmul.f32 %v1029_v27, %v395_v36 }
  0xb5   : > { %v528_v38 = vmax.f32 %v496_v37, 0.0  ;;  %v493_v50 = vadd.f32 %v1037_v31, %v459_v43  ;;  %v449_v37 = vmul.f32 %v1029_v27, %v1039_v33 }
  0xb7   : > { %v1044_v40 = vpop.f32.mrf.mxu3  ;;  %560 = vmatpush.msrb.mxu1 %v528_v38  ;;  %v525_v52 = vmax.f32 %v493_v50, 0.0  ;;  %v483_v53 = vadd.f32 %v1037_v31, %v449_v37 }
  0xb8   : > { %v1056_v59 = vpop.f32.mrf.mxu2 }
  0xb9   : > { %v372_v41 = vpop.f32.mrf.mxu0  ;;  %561 = vmatpush.msrb.mxu1 %v527_v39 }
  0xba   : > { %v397_v42 = vpop.f32.mrf.mxu1  ;;  %v450_v28 = vmul.f32 %v1029_v27, %v372_v41 }
  0xbb   : > { %v460_v44 = vmul.f32 %v1029_v27, %v397_v42  ;;  %v546_v42 = vshrl.u32 %v545_v20, 7 }
  0xbc   : > { %v484_v48 = vadd.f32 %v1037_v31, %v450_v28 }
  0xbd   : > { %v494_v46 = vadd.f32 %v1037_v31, %v460_v44 }
  0xbf   : > { %v1050_v47 = vpop.f32.mrf.mxu3  ;;  %v526_v49 = vmax.f32 %v494_v46, 0.0  ;;  %v448_v46 = vmul.f32 %v1029_v27, %v1024_v26 }
  0xc0   : > { %v1058_v62 = vpop.f32.mrf.mxu2  ;;  %v472_v26 = vmul.f32 %v1029_v27, %v1050_v47  ;;  %v548_v47 = vand.u32 127, %v545_v20 }
  0xc1   : > { %v375_v51 = vpop.f32.mrf.mxu0  ;;  %562 = vmatpush.msrb.mxu1 %v526_v49  ;;  %v464_v28 = vmul.f32 %v1029_v27, %v1058_v62 }
  0xc2   : > { %v451_v18 = vmul.f32 %v1029_v27, %v375_v51 }
  0xc3   : > { %563 = vmatpush.msrb.mxu1 %v525_v52  ;;  %v447_v52 = vmul.f32 %v1029_v27, %v1020_v22  ;;  %v516_v22 = vmax.f32 %v484_v48, 0.0  ;;  %v498_v37 = vadd.f32 %v1037_v31, %v464_v28 }
  0xc4   : > { %v485_v38 = vadd.f32 %v1037_v31, %v451_v18 }
  0xc5   : > { %564 = vmatpush.msrb.mxu1 %v524_v54  ;;  %v1095_v54 = vmul.u32 256, %v546_v42 }
  0xc6   : > { %v517_v55 = vmax.f32 %v485_v38, 0.0 }
  0xc7   : > { %v430_v57 = vpop.f32.mrf.mxu3  ;;  %565 = vmatpush.msrb.mxu1 %v523_v56  ;;  %vm551_vm2 = vcmp.ge.s32.totalorder %v548_v47, %v1095_v54 }
  0xc8   : > { %v1060_v2 = vpop.f32.mrf.mxu2  ;;  %v473_v49 = vmul.f32 %v1029_v27, %v430_v57 }
  0xc9   : > { %v377_v58 = vpop.f32.mrf.mxu0 }
  0xca   : > { %v452_v13 = vmul.f32 %v1029_v27, %v377_v58  ;;  %v482_v58 = vadd.f32 %v1037_v31, %v448_v46 }
  0xcc   : > { %v486_v29 = vadd.f32 %v1037_v31, %v452_v13 }
  0xce   : > { %v518_v33 = vmax.f32 %v486_v29, 0.0 }
  0xcf   : > { %v432_v60 = vpop.f32.mrf.mxu3 }
  0xd0   : > { %v1063_v7 = vpop.f32.mrf.mxu2  ;;  %v474_v43 = vmul.f32 %v1029_v27, %v432_v60  ;;  %v471_v60 = vmul.f32 %v1029_v27, %v1044_v40  ;;  %v506_v40 = vadd.f32 %v1037_v31, %v472_v26 }
  0xd1   : > { %v380_v61 = vpop.f32.mrf.mxu0  ;;  %v466_v18 = vmul.f32 %v1029_v27, %v1063_v7  ;;  %v463_v7 = vmul.f32 %v1029_v27, %v1056_v59 }
  0xd2   : > { %v453_v11 = vmul.f32 %v1029_v27, %v380_v61  ;;  %v508_v57 = vadd.f32 %v1037_v31, %v474_v43 }
  0xd3   : > { %v497_v38 = vadd.f32 %v1037_v31, %v463_v7 }
  0xd4   : > { %v487_v25 = vadd.f32 %v1037_v31, %v453_v11  ;;  %v505_v11 = vadd.f32 %v1037_v31, %v471_v60 }
  0xd5   : > { %v529_v59 = vmax.f32 %v497_v38, 0.0 }
  0xd6   : > { %v519_v41 = vmax.f32 %v487_v25, 0.0 }
  0xd7   : > { %v435_v63 = vpop.f32.mrf.mxu3 }
  0xd8   : > { %v475_v32 = vmul.f32 %v1029_v27, %v435_v63  ;;  %v415_v39 = vpop.f32.mrf.mxu2  ;;  %v507_v63 = vadd.f32 %v1037_v31, %v473_v49 }
  0xd9   : > { %v382_v0 = vpop.f32.mrf.mxu0 }
  0xda   : > { %v454_v8 = vmul.f32 %v1029_v27, %v382_v0  ;;  %v509_v51 = vadd.f32 %v1037_v31, %v475_v32  ;;  %v481_v0 = vadd.f32 %v1037_v31, %v447_v52  ;;  %v500_v32 = vadd.f32 %v1037_v31, %v466_v18 }
  0xdc   : > { %v488_v17 = vadd.f32 %v1037_v31, %v454_v8  ;;  %v541_v61 = vmax.f32 %v509_v51, 0.0  ;;  %v469_v8 = vmul.f32 %v1029_v27, %v1022_v24  ;;  %v537_v24 = vmax.f32 %v505_v11, 0.0 }
  0xde   : > { %v520_v34 = vmax.f32 %v488_v17, 0.0  ;;  %v904_v17 = vmov 0.00390625  }
  0xdf   : > { %v437_v1 = vpop.f32.mrf.mxu3 }
  0xe0   : > { %v476_v21 = vmul.f32 %v1029_v27, %v437_v1  ;;  %v553_v1 = vadd.s32 256, %v1095_v54 }
  0xe1   : > { %v385_v3 = vpop.f32.mrf.mxu0 }
  0xe2   : > { %v455_v4 = vmul.f32 %v1029_v27, %v385_v3  ;;  %v510_v45 = vadd.f32 %v1037_v31, %v476_v21  ;;  %v470_v3 = vmul.f32 %v1029_v27, %v1032_v30  ;;  %vm554_vm3 = vcmp.lt.s32.totalorder %v548_v47, %v553_v1 }
  0xe3   : > { %v513_v30 = vmax.f32 %v481_v0, 0.0  ;;  %vm556_vm4 = vmand %vm551_vm2, %vm554_vm3  ;;  %v465_v21 = vmul.f32 %v1029_v27, %v1060_v2  ;;  %v532_v2 = vmax.f32 %v500_v32, 0.0 }
  0xe4   : > { %v489_v10 = vadd.f32 %v1037_v31, %v455_v4  ;;  %v542_v56 = vmax.f32 %v510_v45, 0.0  ;;  %v515_v4 = vmax.f32 %v483_v53, 0.0 }
  0xe6   : > { %v521_v16 = vmax.f32 %v489_v10, 0.0  ;;  %v539_v10 = vmax.f32 %v507_v63, 0.0 }
  0xe7   : > { %v440_v5 = vpop.f32.mrf.mxu3 }
  0xe8   : > { %v477_v14 = vmul.f32 %v1029_v27, %v440_v5  ;;  %v540_v5 = vmax.f32 %v508_v57, 0.0 }
  0xe9   : > { %v387_v6 = vpop.f32.mrf.mxu0 }
  0xea   : > { %v456_v9 = vmul.f32 %v1029_v27, %v387_v6  ;;  %v511_v36 = vadd.f32 %v1037_v31, %v477_v14  ;;  %v417_v6 = vpop.f32.mrf.mxu2  ;;  %v504_v14 = vadd.f32 %v1037_v31, %v470_v3 }
  0xeb   : > { %v468_v13 = vmul.f32 %v1029_v27, %v417_v6 }
  0xec   : > { %v490_v12 = vadd.f32 %v1037_v31, %v456_v9  ;;  %v543_v50 = vmax.f32 %v511_v36, 0.0  ;;  %v514_v9 = vmax.f32 %v482_v58, 0.0  ;;  %v549_v36 = vadd.s32 128, %v548_v47 }
  0xed   : > { %v502_v20 = vadd.f32 %v1037_v31, %v468_v13 }
  0xee   : > { %v522_v15 = vmax.f32 %v490_v12, 0.0  ;;  %v538_v12 = vmax.f32 %v506_v40, 0.0  ;;  %vm552_vm5 = vcmp.ge.s32.totalorder %v549_v36, %v1095_v54  ;;  %vm555_vm6 = vcmp.lt.s32.totalorder %v549_v36, %v553_v1 }
  0xef   : > { %v442_v19 = vpop.f32.mrf.mxu3  ;;  %v534_v29 = vmax.f32 %v502_v20, 0.0  ;;  %vm557_vm7 = vmand %vm552_vm5, %vm555_vm6 }
  0xf0   : > { %v478_v23 = vmul.f32 %v1029_v27, %v442_v19  ;;  %566 = vmatpush.msrb.mxu1 %v522_v15  ;;  %v467_v15 = vmul.f32 %v1029_v27, %v415_v39  ;;  %v536_v19 = vmax.f32 %v504_v14, 0.0  ;;  %v530_v27 = vmax.f32 %v498_v37, 0.0 }
  0xf2   : > { %567 = vmatpush.msrb.mxu1 %v521_v16  ;;  %v512_v35 = vadd.f32 %v1037_v31, %v478_v23  ;;  %v503_v16 = vadd.f32 %v1037_v31, %v469_v8  ;;  %v501_v25 = vadd.f32 %v1037_v31, %v467_v15 }
  0xf4   : > { %568 = vmatpush.msrb.mxu1 %v520_v34  ;;  %v544_v44 = vmax.f32 %v512_v35, 0.0  ;;  %v535_v23 = vmax.f32 %v503_v16, 0.0  ;;  %v533_v34 = vmax.f32 %v501_v25, 0.0  ;;  %v499_v35 = vadd.f32 %v1037_v31, %v465_v21  ;;  %v600_v31 = vld [vmem:[%s1172_s2 + $0x2] sm:$0x1] }
  0xf6   : > { %569 = vmatpush.msrb.mxu1 %v519_v41  ;;  %580 = vmatpush.msrb.mxu2 %v544_v44  ;;  %v531_v62 = vmax.f32 %v499_v35, 0.0  ;;  %v602_v41 = vld [vmem:[%s1172_s2 + $0x3] sm:$0x1] }
  0xf8   : > { %570 = vmatpush.msrb.mxu1 %v518_v33  ;;  %581 = vmatpush.msrb.mxu2 %v543_v50 }
  0xfa   : > { %571 = vmatpush.msrb.mxu1 %v517_v55  ;;  %582 = vmatpush.msrb.mxu2 %v542_v56 }
  0xfc   : > { %572 = vmatpush.msrb.mxu1 %v516_v22  ;;  %583 = vmatpush.msrb.mxu2 %v541_v61 }
  0xfe   : > { %573 = vmatpush.msrb.mxu1 %v515_v4  ;;  %584 = vmatpush.msrb.mxu2 %v540_v5 }
 0x100   : > { %574 = vmatpush.msrb.mxu1 %v514_v9  ;;  %585 = vmatpush.msrb.mxu2 %v539_v10 }
 0x102   : > { %575 = vmatpush.msrb.mxu1 %v513_v30  ;;  %586 = vmatpush.msrb.mxu2 %v538_v12 }
 0x103   : > { %767 = vmatmul.msk.f32.vlgmr.msrb.gmra.mxu1 %vm556_vm4, %v904_v17 }
 0x104   : > { %587 = vmatpush.msrb.mxu2 %v537_v24 }
 0x106   : > { %588 = vmatpush.msrb.mxu2 %v536_v19 }
 0x108   : > { %589 = vmatpush.msrb.mxu2 %v535_v23 }
 0x10a   : > { %590 = vmatpush.msrb.mxu2 %v534_v29 }
 0x10c   : > { %591 = vmatpush.msrb.mxu2 %v533_v34 }
 0x10e   : > { %592 = vmatpush.msrb.mxu2 %v532_v2 }
 0x110   : > { %593 = vmatpush.msrb.mxu2 %v531_v62 }
 0x112   : > { %594 = vmatpush.msrb.mxu2 %v530_v27 }
 0x114   : > { %595 = vmatpush.msrb.mxu2 %v529_v59 }
 0x115   : > { %768 = vmatmul.msk.f32.vlgmr.msrb.gmra.mxu2 %vm557_vm7, %v904_v17 }
 0x180   : > { %v577_v39 = vpop.f32.mrf.mxu1 }
 0x198   : > { %v597_v42 = vpop.f32.mrf.mxu2 }
 0x199   : > { %v598_v43 = vadd.f32 %v597_v42, %v577_v39 }
 0x19b   : > { %v601_v44 = vmul.f32 %v600_v31, %v598_v43 }
 0x19d   : > { %v603_v45 = vadd.f32 %v602_v41, %v601_v44 }
 0x19f   : > { %604 = vst [vmem:[%s163_s29] sm:$0x1] %v603_v45 }
 0x1a0   : > { %867 = shalt.err (!%p864_p3)
}
 0x1a1   : > { %798 = dma.vmem_to_hbm [thread:$0]  (%p963_p5), %s617_s30, 16, %s619_s4, %s606_s16  }
 0x1a2 PF: > { %p804_p4 = scmp.ge.s32.totalorder %s902_s15, 2  ;;  %s630_s17 = sand.u32 1, %s890_s12  }
 0x1a3   : > { %s631_s19 = scalar_lea.sflag [#allocation3], %s630_s17 }
 0x1a4   : > { %p801_p7 = pnand %p804_p4, %p967_p6 }
 0x1a6   : > { %p802_p8 = pneg %p801_p7 }
 0x1a8   : > { %885 = dma.done.wait (%p802_p8), %s631_s19, 16  }
 0x1a9   : > { %887 = vsyncadd (%p802_p8), %s631_s19, 4294967280  ;;  %p13_p9 = scmp.ge.s32.totalorder %s950_s18, 4   ;;  %s1176_s12 = smov %s894_s13 }
 0x1aa   : > { %s1177_s13 = smov %s898_s14  ;;  %s1178_s14 = smov %s961_s21 }
 0x1ab   : > { %s1179_s15 = smov %s950_s18  ;;  %15 = sbr.rel (!%p13_p9) target bundleno = 3 (0x3), region = 67 }
 0x1b0   :  { %636 = vsyncpa [#allocation3], 1 }
 0x1b1   :  { %638 = vsyncpa [#allocation3 + $0x1], 1 }

</bundles_post_ra>
